<compile_context>
chip_gen: v6e
topology: v6e:2x2x1
jax: 0.10.0
libtpu: 0.0.40
codegen_flags: <defaults>
</compile_context>

<pallas_src>
import functools

import jax
import jax.numpy as jnp
from jax.experimental import pallas as pl
from jax.experimental.pallas import tpu as pltpu


def _round_up(x, m):
    return (x + m - 1) // m * m


def _cdiv(a, b):
    return (a + b - 1) // b


def _vmem_capacity_bytes():
    """Per-core VMEM capacity (generation-aware); conservative fallback."""
    try:
        info = pltpu.get_tpu_info()
        cap = getattr(info, "vmem_capacity_bytes", None)
        if cap:
            return int(cap)
    except Exception:
        pass
    return 64 << 20  # v7x-sized conservative default


@functools.lru_cache(maxsize=None)
def _pipeline_mode_supported():
    """Capability probe: does BlockSpec(pipeline_mode=pl.Buffered(1)) lower?

    Run once on a trivially-correct tiny kernel so real compile errors in the
    production kernel are never swallowed by a fallback path.
    """
    def _probe_kernel(x_ref, o_ref):
        o_ref[...] = x_ref[...] * 2.0

    try:
        spec = pl.BlockSpec((8, 128), lambda i: (0, 0),
                            pipeline_mode=pl.Buffered(1))
        f = pl.pallas_call(
            _probe_kernel,
            out_shape=jax.ShapeDtypeStruct((8, 128), jnp.float32),
            grid=(2,),
            in_specs=[spec],
            out_specs=pl.BlockSpec((8, 128), lambda i: (0, 0)),
        )
        jax.block_until_ready(f(jnp.ones((8, 128), jnp.float32)))
        return True
    except Exception:
        return False


def _feat_norm_kernel(x_ref, w_ref, b_ref, o_ref):
    """One tile of patches: conv-as-matmul -> bias -> L2 normalize rows.

    x_ref : (TM, K)  bf16 patch pixels
    w_ref : (K, F)   bf16 patchify-conv weight (resident across the grid)
    b_ref : (1, F)   f32  patchify-conv bias   (resident across the grid)
    o_ref : (TM, F)  L2-normalized feature rows
    """
    # "features(input_img)" hot path: patchify conv == MXU matmul, f32 acc.
    y = jnp.dot(x_ref[...], w_ref[...], preferred_element_type=jnp.float32)
    y = y + b_ref[...]
    # output / torch.norm(output, 2, -1, keepdim=True)
    # rsqrt-multiply (EUP slot) instead of sqrt + divide (VALU); eps guards a
    # fully-cancelling feature row (0/0 -> NaN).
    inv = jax.lax.rsqrt(jnp.sum(y * y, axis=-1, keepdims=True) + 1e-12)
    o_ref[...] = (y * inv).astype(o_ref.dtype)


@functools.partial(
    jax.jit,
    static_argnames=("patch", "tile_m", "lhs_bufs",
                     "resident_single_buffered", "out_dtype", "vmem_limit"),
)
def _net_forward_jit(x_nchw, w_conv, b_conv, *, patch, tile_m, lhs_bufs,
                     resident_single_buffered, out_dtype, vmem_limit):
    B, C, H, W = x_nchw.shape
    K, F = w_conv.shape
    m, n = H // patch, W // patch
    N = B * m * n

    # Glue: im2col patch extraction (pure layout) + bf16 cast, fused under jit
    # and eligible for input-fusion into the pallas_call lhs DMA.
    patches = (
        x_nchw.reshape(B, C, m, patch, n, patch)
        .transpose(0, 2, 4, 1, 3, 5)              # (B, m, n, C, P, P)
        .reshape(N, K)
        .astype(jnp.bfloat16)
    )
    w_bf16 = w_conv.astype(jnp.bfloat16)
    bias2d = b_conv.reshape(1, F).astype(jnp.float32)

    grid_m = _cdiv(N, tile_m)

    lhs_mode = {}
    res_mode = {}
    if resident_single_buffered:
        res_mode = dict(pipeline_mode=pl.Buffered(1))      # resident, 1 buffer
        if lhs_bufs != 2:
            lhs_mode = dict(pipeline_mode=pl.Buffered(lhs_bufs))

    out_flat = pl.pallas_call(
        _feat_norm_kernel,
        out_shape=jax.ShapeDtypeStruct((N, F), out_dtype),
        grid_spec=pltpu.PrefetchScalarGridSpec(
            num_scalar_prefetch=0,
            grid=(grid_m,),
            in_specs=[
                # Full-K blocks (block dim == array dim satisfies the (8,128)
                # rule); the partial last M block is masked on write.
                pl.BlockSpec((tile_m, K), lambda i: (i, 0), **lhs_mode),
                pl.BlockSpec((K, F), lambda i: (0, 0), **res_mode),
                pl.BlockSpec((1, F), lambda i: (0, 0), **res_mode),
            ],
            out_specs=pl.BlockSpec((tile_m, F), lambda i: (i, 0)),
        ),
        compiler_params=pltpu.CompilerParams(
            dimension_semantics=("parallel",),
            vmem_limit_bytes=vmem_limit,
            # Let XLA fuse the im2col transpose / cast into the lhs operand.
            allow_input_fusion=[True, False, False],
        ),
    )(patches, w_bf16, bias2d)

    # output_img.view(batch, m, n, feat)
    return out_flat.reshape(B, m, n, F)


def net_forward(x_nchw, w_conv, b_conv, *, patch, out_dtype=jnp.float32):
    """Pallas implementation of Net.forward with a synthetic backbone.

    x_nchw : (B, C, H, W) float32   -- NCHW, like PyTorch
    w_conv : (C*patch*patch, F)     -- patchify-conv weight (already flattened)
    b_conv : (F,)                   -- patchify-conv bias
    out_dtype: f32 (module-faithful) or bf16 to halve HBM write traffic.
    returns: (B, m, n, F), rows L2-normalized over F
    """
    B, C, H, W = x_nchw.shape
    K, F = w_conv.shape
    assert K == C * patch * patch
    assert F % 128 == 0
    m, n = H // patch, W // patch
    N = B * m * n

    vmem_cap = _vmem_capacity_bytes()
    buffered_ok = _pipeline_mode_supported()

    # Buffer counts actually used (fallback budget differs from the buffered
    # one -- no more "limit sized for the other configuration").
    w_bufs = 1 if buffered_ok else 2
    lhs_bufs = 3 if (buffered_ok and vmem_cap >= (100 << 20)) else 2
    out_bufs = 2
    out_bytes = jnp.dtype(out_dtype).itemsize

    def _need(tm):
        return (lhs_bufs * tm * K * 2            # lhs tiles (bf16)
                + w_bufs * (K * F * 2 + F * 4)   # weight (bf16) + bias (f32)
                + out_bufs * tm * F * out_bytes) # output tiles

    # Biggest MXU-sized tile that fits the per-generation VMEM budget
    # (512 on v5e/v6e's 128 MiB, smaller on v7x's 64 MiB if needed).
    budget = int(0.80 * vmem_cap)
    tile_m = 128
    for cand in (512, 384, 256, 128):
        if _need(cand) <= budget:
            tile_m = cand
            break

    # Don't tile beyond the data, but keep >= 2 grid steps whenever possible
    # so both TensorCores of a megacore part (v7x) get work.
    tile_m = min(tile_m, _round_up(N, 8))
    if N > 8 and _cdiv(N, tile_m) < 2:
        tile_m = _round_up(_cdiv(N, 2), 8)

    need = _need(tile_m)
    vmem_limit = int(min(0.9 * vmem_cap, max(2 * need, 16 << 20)))
    vmem_limit = max(vmem_limit, need + (2 << 20))

    return _net_forward_jit(
        x_nchw, w_conv, b_conv,
        patch=patch, tile_m=tile_m, lhs_bufs=lhs_bufs,
        resident_single_buffered=buffered_ok,
        out_dtype=out_dtype, vmem_limit=vmem_limit)


def reference_forward(x_nchw, w_conv, b_conv, *, patch,
                      operand_dtype=jnp.float32):
    """Pure-JAX reference of the same computation (optionally bf16 operands)."""
    B, C, H, W = x_nchw.shape
    K, F = w_conv.shape
    m, n = H // patch, W // patch
    patches = (
        x_nchw.reshape(B, C, m, patch, n, patch)
        .transpose(0, 2, 4, 1, 3, 5)
        .reshape(B * m * n, K)
    )
    lhs = patches.astype(operand_dtype).astype(jnp.float32)
    rhs = w_conv.astype(operand_dtype).astype(jnp.float32)
    y = lhs @ rhs + b_conv[None, :].astype(jnp.float32)
    y = y * jax.lax.rsqrt(jnp.sum(y * y, axis=-1, keepdims=True) + 1e-12)
    return y.reshape(B, m, n, F)


if __name__ == "__main__":
    key = jax.random.PRNGKey(0)
    kx, kw, kb = jax.random.split(key, 3)

    # Small shapes consistent with the module's forward:
    #   input image NCHW, backbone downsamples spatial dims and expands
    #   channels to `feat`, output is (B, m, n, feat) L2-normalized.
    B, C, H, W = 2, 3, 32, 32
    PATCH = 8                # synthetic backbone downsampling factor
    FEAT = 256               # synthetic stand-in for resnet152's 2048
    K = C * PATCH * PATCH

    x = jax.random.normal(kx, (B, C, H, W), dtype=jnp.float32)

    # Deterministic Xavier-uniform-style init for the patchify conv weight.
    limit = jnp.sqrt(6.0 / (K + FEAT))
    w_conv = jax.random.uniform(kw, (K, FEAT), jnp.float32, -limit, limit)
    b_conv = jax.random.uniform(kb, (FEAT,), jnp.float32, -0.01, 0.01)

    out = net_forward(x, w_conv, b_conv, patch=PATCH)
    out = jax.block_until_ready(out)

    m_out, n_out = H // PATCH, W // PATCH
    assert out.shape == (B, m_out, n_out, FEAT)

    # Tight check against a reference using the same bf16 operand rounding.
    ref_bf16 = reference_forward(x, w_conv, b_conv, patch=PATCH,
                                 operand_dtype=jnp.bfloat16)
    assert jnp.allclose(out, ref_bf16, atol=1e-4, rtol=1e-4)

    # Loose check against the full-f32 reference (bf16 operand rounding).
    ref_f32 = reference_forward(x, w_conv, b_conv, patch=PATCH)
    assert jnp.allclose(out, ref_f32, atol=5e-3, rtol=1e-2)

    # Every feature vector should have (near-)unit L2 norm.
    assert jnp.allclose(
        jnp.linalg.norm(out, axis=-1),
        jnp.ones((B, m_out, n_out)),
        atol=1e-4,
    )

    print("KERNEL_OK")
</pallas_src>

<mosaic_0001>
module attributes {stable_mosaic.version = 11 : i64} {
  func.func @_probe_kernel(%arg0: i32, %arg1: memref<8x128xf32, #tpu.memory_space<vmem>>, %arg2: memref<8x128xf32, #tpu.memory_space<vmem>>) attributes {dimension_semantics = [#tpu.dimension_semantics<arbitrary>], iteration_bounds = array<i64: 2>, scalar_prefetch = 0 : i64, scratch_operands = 0 : i64, tpu.core_type = #tpu.core_type<tc>, window_params = [{pipeline_mode = #tpu.pipeline_mode<synchronous>, transform_indices = @transform_0, window_bounds = array<i64: 8, 128>}, {pipeline_mode = #tpu.pipeline_mode<synchronous>, transform_indices = @transform_1, window_bounds = array<i64: 8, 128>}]} {
    %c0 = arith.constant 0 : index
    %c0_0 = arith.constant 0 : index
    %0 = vector.load %arg1[%c0, %c0_0] : memref<8x128xf32, #tpu.memory_space<vmem>>, vector<8x128xf32>
    %cst = arith.constant 2.000000e+00 : f32
    %1 = vector.broadcast %cst : f32 to vector<8x128xf32>
    %2 = arith.mulf %0, %1 : vector<8x128xf32>
    %c0_1 = arith.constant 0 : index
    %c0_2 = arith.constant 0 : index
    %3 = vector.load %arg2[%c0_1, %c0_2] : memref<8x128xf32, #tpu.memory_space<vmem>>, vector<8x128xf32>
    tpu.vector_store %arg2[%c0_1, %c0_2], %2 {strides = array<i32>} : memref<8x128xf32, #tpu.memory_space<vmem>>, vector<8x128xf32>,
    return
  }
  func.func @transform_0(%arg0: i32) -> (i32, i32) {
    %c0_i32 = arith.constant 0 : i32
    %c0_i32_0 = arith.constant 0 : i32
    %c0_i32_1 = arith.constant 0 : i32
    return %c0_i32, %c0_i32_0 : i32, i32
  }
  func.func @transform_1(%arg0: i32) -> (i32, i32) {
    %c0_i32 = arith.constant 0 : i32
    %c0_i32_0 = arith.constant 0 : i32
    %c0_i32_1 = arith.constant 0 : i32
    return %c0_i32, %c0_i32_0 : i32, i32
  }
}

module attributes {stable_mosaic.version = 11 : i64} {
  func.func @_feat_norm_kernel(%arg0: i32, %arg1: memref<16x192xbf16, #tpu.memory_space<vmem>>, %arg2: memref<192x256xbf16, #tpu.memory_space<vmem>>, %arg3: memref<1x256xf32, #tpu.memory_space<vmem>>, %arg4: memref<16x256xf32, #tpu.memory_space<vmem>>) attributes {dimension_semantics = [#tpu.dimension_semantics<parallel>], iteration_bounds = array<i64: 2>, scalar_prefetch = 0 : i64, scratch_operands = 0 : i64, tpu.core_type = #tpu.core_type<tc>, window_params = [{transform_indices = @transform_0, window_bounds = array<i64: 16, 192>}, {pipeline_mode = #tpu.pipeline_mode<synchronous>, transform_indices = @transform_1, window_bounds = array<i64: 192, 256>}, {pipeline_mode = #tpu.pipeline_mode<synchronous>, transform_indices = @transform_2, window_bounds = array<i64: 1, 256>}, {transform_indices = @transform_3, window_bounds = array<i64: 16, 256>}]} {
    %c0 = arith.constant 0 : index
    %c0_0 = arith.constant 0 : index
    %0 = vector.load %arg1[%c0, %c0_0] : memref<16x192xbf16, #tpu.memory_space<vmem>>, vector<16x192xbf16>
    %c0_1 = arith.constant 0 : index
    %c0_2 = arith.constant 0 : index
    %1 = vector.load %arg2[%c0_1, %c0_2] : memref<192x256xbf16, #tpu.memory_space<vmem>>, vector<192x256xbf16>
    %cst = arith.constant dense<0.000000e+00> : vector<16x256xf32>
    %2 = tpu.matmul %0, %1, %cst {dimension_numbers = #tpu.dot_dimension_numbers<[1], [0], [0], [1], [0, 0, 1, 1], [], []>} : vector<16x192xbf16>, vector<192x256xbf16>, vector<16x256xf32> -> vector<16x256xf32>
    %c0_3 = arith.constant 0 : index
    %c0_4 = arith.constant 0 : index
    %3 = vector.load %arg3[%c0_3, %c0_4] : memref<1x256xf32, #tpu.memory_space<vmem>>, vector<1x256xf32>
    %4 = vector.broadcast %3 : vector<1x256xf32> to vector<16x256xf32>
    %5 = arith.addf %2, %4 : vector<16x256xf32>
    %6 = arith.mulf %5, %5 : vector<16x256xf32>
    %cst_5 = arith.constant dense<0.000000e+00> : vector<16xf32>
    %7 = vector.multi_reduction <add>, %6, %cst_5 [1] : vector<16x256xf32> to vector<16xf32>
    %8 = vector.shape_cast %7 : vector<16xf32> to vector<16x1xf32>
    %cst_6 = arith.constant 9.99999996E-13 : f32
    %9 = vector.broadcast %cst_6 : f32 to vector<16x1xf32>
    %10 = arith.addf %8, %9 : vector<16x1xf32>
    %11 = math.rsqrt %10 : vector<16x1xf32>
    %12 = vector.broadcast %11 : vector<16x1xf32> to vector<16x256xf32>
    %13 = arith.mulf %5, %12 : vector<16x256xf32>
    %c0_7 = arith.constant 0 : index
    %c0_8 = arith.constant 0 : index
    %14 = vector.load %arg4[%c0_7, %c0_8] : memref<16x256xf32, #tpu.memory_space<vmem>>, vector<16x256xf32>
    tpu.vector_store %arg4[%c0_7, %c0_8], %13 {strides = array<i32>} : memref<16x256xf32, #tpu.memory_space<vmem>>, vector<16x256xf32>,
    return
  }
  func.func @transform_0(%arg0: i32) -> (i32, i32) {
    %c0_i32 = arith.constant 0 : i32
    %c0_i32_0 = arith.constant 0 : i32
    return %arg0, %c0_i32 : i32, i32
  }
  func.func @transform_1(%arg0: i32) -> (i32, i32) {
    %c0_i32 = arith.constant 0 : i32
    %c0_i32_0 = arith.constant 0 : i32
    %c0_i32_1 = arith.constant 0 : i32
    return %c0_i32, %c0_i32_0 : i32, i32
  }
  func.func @transform_2(%arg0: i32) -> (i32, i32) {
    %c0_i32 = arith.constant 0 : i32
    %c0_i32_0 = arith.constant 0 : i32
    %c0_i32_1 = arith.constant 0 : i32
    return %c0_i32, %c0_i32_0 : i32, i32
  }
  func.func @transform_3(%arg0: i32) -> (i32, i32) {
    %c0_i32 = arith.constant 0 : i32
    %c0_i32_0 = arith.constant 0 : i32
    return %arg0, %c0_i32 : i32, i32
  }
}

</mosaic_0001>

<bundles_post_ra>
// kernel: tpu_custom_call.1
= control target key start
LH: loop header
LB: loop body
LE: loop exit
PB: predicated region body
PF: predicated region fallthrough
CT: control target
= control target key end

     0   :  { %6 = vsyncpa [#allocation3], 0  ;;  %s305_s0 = inlined_call_operand.hbm [shape: f32[8,128], index: 0, kind: input, shape index: {}]   ;;  %s306_s1 = inlined_call_operand.hbm [shape: f32[8,128], index: 1, kind: output, shape index: {}]  }
   0x1   :  { %7 = vsyncpa [#allocation4], 0  ;;  %s258_s6 = smov 0  }
   0x2 LB: > { %s145_s7 = sadd.s32 4294967295, %s244_s6   ;;  %p146_p0 = scmp.ge.s32.totalorder %s244_s6, 1  ;;  %s244_s6 = sphi %s258_s6, %s13_s6  }
   0x3   : > { %p60_p1 = scmp.lt.s32.totalorder %s244_s6, 3  ;;  %p270_p3 = scmp.eq.s32.totalorder %s145_s7, 0 }
   0x4   : > { %s246_s10 = smov [#allocation2]  }
   0x5   : > { %p266_p2 = pnand %p146_p0, %p60_p1  ;;  %s73_s11 = sshll.u32 %s246_s10, 4  ;;  %s74_s11 = int_to_ptr.vmem [resolvable:$true] %s73_s11 }
   0x6   : > { %s191_s12 = scalar_lea.vmem %s74_s11, 128  ;;  %p199_p10 = scmp.lt.s32.totalorder %s74_s11, %s74_s11 }
   0x7   : > { %p162_p4 = pneg %p266_p2  ;;  %p192_p7 = scmp.ne.s32.totalorder %s74_s11, %s191_s12 }
   0x8   : > { %p200_p11 = scmp.lt.s32.totalorder %s191_s12, %s191_s12 }
   0x9   : > { %p163_p5 = pnand %p270_p3, %p162_p4 }
   0xa   : > { %p201_p12 = por %p200_p11, %p199_p10 }
   0xb   : > { %p182_p6 = pneg %p163_p5 }
   0xd   : > { %p194_p8 = pnand %p192_p7, %p182_p6 }
   0xf   : > { %p195_p9 = pneg %p194_p8 }
  0x11   : > { %p202_p13 = pnand %p201_p12, %p195_p9 }
  0x13   : > { %205 = shalt.err (!%p202_p13)
}
  0x14   : > { %165 = dma.hbm_to_vmem [thread:$0]  (!%p163_p5), %s305_s0, 128, %s74_s11, [#allocation3]  }
  0x15   : > { %86 = sbr.rel (%p266_p2) target bundleno = 42 (0x2a), region = 24 }
  0x1a   : > { %235 = dma.done.wait (%p270_p3), [#allocation3], 128  }
  0x1b   : > { %237 = vsyncadd (%p270_p3), [#allocation3], 4294967168  ;;  %s247_s15 = smov [#allocation5]   ;;  %v96_v0 = vld [vmem:[#allocation2] sm:$0xff]  ;;  %p287_p0 = scmp.eq.s32.totalorder %s145_s7, 1 }
  0x1c   : > { %s106_s16 = sshll.u32 %s247_s15, 4  ;;  %v97_v1 = vmul.f32 2.0, %v96_v0  ;;  %s107_s16 = int_to_ptr.vmem [resolvable:$true] %s106_s16 }
  0x1d   : > { %s206_s18 = scalar_lea.vmem %s107_s16, 128  ;;  %p213_p5 = scmp.lt.s32.totalorder %s107_s16, %s107_s16 }
  0x1e   : > { %98 = vst [vmem:[#allocation5] sm:$0xff] %v97_v1  ;;  %p207_p1 = scmp.ne.s32.totalorder %s107_s16, %s206_s18  ;;  %p214_p6 = scmp.lt.s32.totalorder %s206_s18, %s206_s18 }
  0x20   : > { %p208_p2 = pnand %p207_p1, %p287_p0  ;;  %p215_p7 = por %p214_p6, %p213_p5 }
  0x22   : > { %p209_p4 = pneg %p208_p2 }
  0x24   : > { %p216_p3 = pnand %p215_p7, %p209_p4 }
  0x26   : > { %219 = shalt.err (!%p216_p3)
}
  0x27   : > { %159 = dma.vmem_to_hbm [thread:$0]  (%p287_p0), %s107_s16, 128, %s306_s1, [#allocation4]  }
  0x28   : > { %239 = dma.done.wait (%p287_p0), [#allocation4], 128  }
  0x29   : > { %241 = vsyncadd (%p287_p0), [#allocation4], 4294967168 }
  0x2a PF: > { %s13_s6 = sadd.s32 1, %s244_s6  }
  0x2b   : > { %p10_p8 = scmp.ge.s32.totalorder %s13_s6, 4  }
  0x2d   :  { %12 = sbr.rel (!%p10_p8) target bundleno = 2 (0x2), region = 53 }
  0x32   :  { %119 = vsyncpa [#allocation3], 1 }
  0x33   :  { %121 = vsyncpa [#allocation3 + $0x1], 1 }
  0x34   :  { %122 = vsyncpa [#allocation4], 1 }
  0x35   :  { %124 = vsyncpa [#allocation4 + $0x1], 1 }

// kernel: _net_forward_jit.1
= control target key start
LH: loop header
LB: loop body
LE: loop exit
PB: predicated region body
PF: predicated region fallthrough
CT: control target
= control target key end

     0   :  { %s595_s12 = smov 0   ;;  %s695_s0 = inlined_call_operand.vmem [shape: bf16[32,192], index: 0, kind: input, shape index: {}]   ;;  %s696_s1 = inlined_call_operand.vmem [shape: bf16[192,256], index: 1, kind: input, shape index: {}]   ;;  %s697_s2 = inlined_call_operand.vmem [shape: f32[1,256], index: 2, kind: input, shape index: {}]   ;;  %s698_s3 = inlined_call_operand.vmem [shape: f32[32,256], index: 3, kind: output, shape index: {}]  }
   0x1 LB: > { %s474_s13 = sadd.s32 4294967295, %s573_s12   ;;  %p478_p0 = scmp.ge.s32.totalorder %s573_s12, 1  ;;  %s573_s12 = sphi %s595_s12, %s13_s12  }
   0x2   : > { %p139_p1 = scmp.lt.s32.totalorder %s573_s12, 3 }
   0x4   : > { %p140_p2 = pnand %p478_p0, %p139_p1 }
   0x5   : > { %s479_s16 = sshll.u32 (!%p140_p2), %s474_s13, 1 }
   0x6   : > { %143 = sbr.rel (%p140_p2) target bundleno = 422 (0x1a6), region = 32  ;;  %p166_p3 = scmp.lt.s32.totalorder (!%p140_p2), %s479_s16, 3 }
   0xb   : > { %v524_v0 = vld [vmem:[%s696_s1 + $0x74] ss:$8 sps:$4 sm:$0xff]   ;;  %v526_v1 = vld [vmem:[%s696_s1 + $0x70] ss:$8 sps:$4 sm:$0xff]   ;;  %v527_v2 = vld [vmem:[%s696_s1 + $0x64] ss:$8 sps:$4 sm:$0xff]   ;;  %v208_v26 = vlaneseq }
   0xc   : > { %351 = vmatprep.subr.bf16.mxu0 %v524_v0  ;;  %v529_v3 = vld [vmem:[%s696_s1 + $0x60] ss:$8 sps:$4 sm:$0xff]   ;;  %v530_v4 = vld [vmem:[%s696_s1 + $0x54] ss:$8 sps:$4 sm:$0xff]   ;;  %v532_v5 = vld [vmem:[%s696_s1 + $0x50] ss:$8 sps:$4 sm:$0xff]  }
   0xd   : > { %352 = vmatpush1.bf16.msra.mxu0 %v526_v1  ;;  %s700_s16 = smov (!%p166_p3, %s479_s16), 3  ;;  %v533_v6 = vld [vmem:[%s696_s1 + $0x44] ss:$8 sps:$4 sm:$0xff]   ;;  %v535_v7 = vld [vmem:[%s696_s1 + $0x40] ss:$8 sps:$4 sm:$0xff]   ;;  %vm347_vm0 = vcmask 523264  }
   0xe   : > { %353 = vmatprep.subr.bf16.mxu0 %v527_v2  ;;  %s514_s4 = sshll.u32 %s700_s16, 3  ;;  %v536_v8 = vld [vmem:[%s696_s1 + $0x34] ss:$8 sps:$4 sm:$0xff]   ;;  %v538_v9 = vld [vmem:[%s696_s1 + $0x30] ss:$8 sps:$4 sm:$0xff]   ;;  %v209_v27 = vshrl.u32 %v208_v26, 7 }
   0xf   : > { %s636_s9 = scalar_lea.vmem %s695_s0, %s514_s4  ;;  %v539_v10 = vld [vmem:[%s696_s1 + $0x24] ss:$8 sps:$4 sm:$0xff]   ;;  %v541_v12 = vld [vmem:[%s696_s1 + $0x20] ss:$8 sps:$4 sm:$0xff]   ;;  %v542_v13 = vld [vmem:[%s696_s1 + $0x14] ss:$8 sps:$4 sm:$0xff]  }
  0x10   : > { %v562_v11 = vld [vmem:[%s636_s9 + $0x4] ss:$8 sps:$4 sm:$0xff]   ;;  %v544_v14 = vld [vmem:[%s696_s1 + $0x10] ss:$8 sps:$4 sm:$0xff]   ;;  %v547_v16 = vld [vmem:[%s696_s1] ss:$8 sps:$4 sm:$0xff]  }
  0x11   : > { %354 = vmatpush1.bf16.msra.mxu0 %v529_v3  ;;  %511 = vmatprep.mubr.msk.bf16.mxu0 %vm347_vm0, %v562_v11  ;;  %v545_v15 = vld [vmem:[%s696_s1 + $0x4] ss:$8 sps:$4 sm:$0xff]   ;;  %v548_v17 = vld [vmem:[%s696_s1 + $0xb4] ss:$8 sps:$4 sm:$0xff]   ;;  %v550_v18 = vld [vmem:[%s696_s1 + $0xb0] ss:$8 sps:$4 sm:$0xff]  }
  0x12   : > { %355 = vmatprep.subr.bf16.mxu0 %v530_v4  ;;  %v551_v19 = vld [vmem:[%s696_s1 + $0xa4] ss:$8 sps:$4 sm:$0xff]   ;;  %v553_v20 = vld [vmem:[%s696_s1 + $0xa0] ss:$8 sps:$4 sm:$0xff]   ;;  %v554_v21 = vld [vmem:[%s696_s1 + $0x94] ss:$8 sps:$4 sm:$0xff]  }
  0x13   : > { %v556_v22 = vld [vmem:[%s696_s1 + $0x90] ss:$8 sps:$4 sm:$0xff]   ;;  %v557_v23 = vld [vmem:[%s696_s1 + $0x84] ss:$8 sps:$4 sm:$0xff]   ;;  %v559_v24 = vld [vmem:[%s696_s1 + $0x80] ss:$8 sps:$4 sm:$0xff]  }
  0x14   : > { %v560_v25 = vld [vmem:[%s636_s9] ss:$8 sps:$4 sm:$0xff]   ;;  %v210_v28 = vsub.s32 0, %v209_v27  ;;  %v214_v30 = vsub.s32 1, %v209_v27  ;;  %s515_s9 = sshll.u32 %s700_s16, 4 }
  0x15   : > { %356 = vmatpush1.bf16.msra.mxu0 %v532_v5  ;;  %v206_v29 = vld [vmem:[%s697_s2] sm:$0x3]  ;;  %s177_s22 = scalar_lea.vmem %s698_s3, %s515_s9 }
  0x16   : > { %357 = vmatprep.subr.bf16.mxu0 %v533_v6  ;;  %v211_v31 = vrot.slane %v206_v29, %v210_v28  ;;  %v215_v32 = vrot.slane %v206_v29, %v214_v30 }
  0x19   : > { %358 = vmatpush1.bf16.msra.mxu0 %v535_v7 }
  0x1a   : > { %359 = vmatprep.subr.bf16.mxu0 %v536_v8 }
  0x1d   : > { %360 = vmatpush1.bf16.msra.mxu0 %v538_v9 }
  0x1e   : > { %361 = vmatprep.subr.bf16.mxu0 %v539_v10 }
  0x21   : > { %362 = vmatpush1.bf16.msra.mxu0 %v541_v12 }
  0x22   : > { %363 = vmatprep.subr.bf16.mxu0 %v542_v13 }
  0x25   : > { %364 = vmatpush1.bf16.msra.mxu0 %v544_v14 }
  0x26   : > { %365 = vmatprep.subr.bf16.mxu0 %v545_v15 }
  0x29   : > { %366 = vmatpush1.bf16.msra.mxu0 %v547_v16 }
  0x2a   : > { %375 = vmatprep.subr.bf16.mxu0 %v548_v17 }
  0x2d   : > { %376 = vmatpush2.bf16.msra.mxu0 %v550_v18 }
  0x2e   : > { %377 = vmatprep.subr.bf16.mxu0 %v551_v19 }
  0x31   : > { %378 = vmatpush2.bf16.msra.mxu0 %v553_v20 }
  0x32   : > { %379 = vmatprep.subr.bf16.mxu0 %v554_v21 }
  0x35   : > { %380 = vmatpush2.bf16.msra.mxu0 %v556_v22 }
  0x36   : > { %381 = vmatprep.subr.bf16.mxu0 %v557_v23 }
  0x39   : > { %382 = vmatpush2.bf16.msra.mxu0 %v559_v24 }
  0x3c   : > { %384 = vmatmul.mubr.bf16.vlgmr.msra.gmra.mxu0 %v560_v25 }
  0xfc   : > { %v385_v33 = vpop.f32.mrf.mxu0 }
  0xfd   : > { %v386_v34 = vadd.f32 %v385_v33, %v211_v31 }
  0xfe   : > { %v387_v35 = vpop.f32.mrf.mxu0 }
  0xff   : > { %v388_v36 = vadd.f32 %v387_v35, %v215_v32  ;;  %v394_v39 = vmul.f32 %v386_v34, %v386_v34 }
 0x100   : > { %v389_v37 = vpop.f32.mrf.mxu0 }
 0x101   : > { %v390_v38 = vadd.f32 %v389_v37, %v211_v31  ;;  %v395_v40 = vmul.f32 %v388_v36, %v388_v36 }
 0x102   : > { %v391_v41 = vpop.f32.mrf.mxu0 }
 0x103   : > { %v392_v42 = vadd.f32 %v391_v41, %v215_v32  ;;  %v398_v43 = vadd.f32 %v395_v40, %v394_v39  ;;  %v396_v44 = vmul.f32 %v390_v38, %v390_v38 }
 0x105   : > { %v397_v45 = vmul.f32 %v392_v42, %v392_v42  ;;  %399 = vadd.xlane.f32.xlu0 %v398_v43 }
 0x107   : > { %v401_v46 = vadd.f32 %v397_v45, %v396_v44 }
 0x109   : > { %402 = vadd.xlane.f32.xlu0 %v401_v46 }
 0x18e   : > { %v400_v47 = vpop.xlane.xlu0 %399 }
 0x18f   : > { %v404_v48 = vadd.f32 1e-12, %v400_v47 }
 0x191   : > { %563 = vrsqrt.f32 %v404_v48 }
 0x192   : > { %v403_v49 = vpop.xlane.xlu0 %402 }
 0x193   : > { %v405_v50 = vadd.f32 1e-12, %v403_v49 }
 0x195   : > { %565 = vrsqrt.f32 %v405_v50 }
 0x19e   : > { %v564_v51 = vpop.eup %563 }
 0x19f   : > { %v408_v52 = vmul.f32 %v564_v51, %v386_v34  ;;  %v409_v53 = vmul.f32 %v564_v51, %v388_v36 }
 0x1a1   : > { %412 = vst [vmem:[%s177_s22] sm:$0xff] %v408_v52  ;;  %413 = vst [vmem:[%s177_s22 + $0x8] sm:$0xff] %v409_v53 }
 0x1a2   : > { %v566_v54 = vpop.eup %565 }
 0x1a3   : > { %v410_v55 = vmul.f32 %v566_v54, %v390_v38  ;;  %v411_v56 = vmul.f32 %v566_v54, %v392_v42 }
 0x1a5   : > { %414 = vst [vmem:[%s177_s22 + $0x10] sm:$0xff] %v410_v55  ;;  %415 = vst [vmem:[%s177_s22 + $0x18] sm:$0xff] %v411_v56 }
 0x1a6 PF: > { %s13_s12 = sadd.s32 1, %s573_s12  }
 0x1a7   : > { %p10_p4 = scmp.ge.s32.totalorder %s13_s12, 4  }
 0x1a9   :  { %12 = sbr.rel (!%p10_p4) target bundleno = 1 (0x1), region = 62 }

</bundles_post_ra>
